<compile_context>
chip_gen: v5e
topology: v5e:2x2
jax: 0.10.0
libtpu: 0.0.40
codegen_flags: <defaults>
</compile_context>

<pallas_src>
import math
from functools import partial

import numpy as np
import jax
import jax.numpy as jnp
from jax.experimental import pallas as pl
from jax.experimental.pallas import tpu as pltpu


# ----------------------------------------------------------------------------
# Config (synthetic, small)
# ----------------------------------------------------------------------------
CFG = dict(
    sampling_rate=1600,   # audio samples per second (synthetic, small)
    km_rate=50,           # code rate
    beta_0=1e-4,
    beta_T=0.02,
    T=50,                 # training diffusion steps
    N=6,                  # eval (DDIM) steps
)

F = 128    # frame size (lane dim)
H = 128    # denoiser hidden width
D = 32     # conditioning width
V = 100    # code vocabulary size
K = 9      # hifigan conv kernel size


# ----------------------------------------------------------------------------
# Fused kernel: all N DDIM steps + HifiGAN-style conv in one pallas_call.
#   grid = (N,), step axis "arbitrary".  The DDIM state x is carried in the
#   resident output block o_ref (same block index every step).
# ----------------------------------------------------------------------------
def fused_vocoder_kernel(coef_ref, mreal_ref, bias_ref, temb_ref, x0_ref,
                         cond_ref, w_in_ref, w_out_ref, wcp_ref, wcc_ref,
                         wcn_ref, o_ref):
    s = pl.program_id(0)
    last = pl.num_programs(0) - 1

    @pl.when(s == 0)
    def _init():
        o_ref[...] = x0_ref[...]          # x_T (noise) seeds the carried state

    x = o_ref[...]                                                   # (Mp,F) f32

    # Denoiser: eps = W_out . tanh(W_in . x + cond_h + temb[s])
    h = jnp.dot(x.astype(jnp.bfloat16), w_in_ref[...],
                preferred_element_type=jnp.float32)                  # (Mp,H)
    h = jnp.tanh(h + cond_ref[...] + temb_ref[pl.ds(s, 1), :])       # f32 (EUP)
    eps = jnp.dot(h.astype(jnp.bfloat16), w_out_ref[...],
                  preferred_element_type=jnp.float32)                # (Mp,F)

    # DDIM update in f32
    x_new = coef_ref[s, 0] * x + coef_ref[s, 1] * eps

    @pl.when(s != last)
    def _carry():
        o_ref[...] = x_new

    @pl.when(s == last)
    def _final_conv():
        # HifiGAN-style 'same' 9-tap conv + bias + tanh on the flattened wav,
        # expressed as 3 banded 128x128 matmuls (prev / current / next frame).
        mp, f = x_new.shape
        row = jax.lax.broadcasted_iota(jnp.int32, (mp, f), 0)
        # Zero the padded (non-real) frame rows so they cannot leak into the
        # halo of the last real frame.
        xm = jnp.where(row < mreal_ref[0], x_new, 0.0)
        # Halo frames via sublane rotation (XLU); zero the wrap-around rows so
        # utterance boundaries see zero padding.
        prev = jnp.where(row == 0, 0.0, pltpu.roll(xm, shift=1, axis=0))
        nxt = jnp.where(row == mp - 1, 0.0,
                        pltpu.roll(xm, shift=mp - 1, axis=0))
        y = jnp.dot(prev.astype(jnp.bfloat16), wcp_ref[...],
                    preferred_element_type=jnp.float32)
        y = y + jnp.dot(xm.astype(jnp.bfloat16), wcc_ref[...],
                        preferred_element_type=jnp.float32)
        y = y + jnp.dot(nxt.astype(jnp.bfloat16), wcn_ref[...],
                        preferred_element_type=jnp.float32)
        o_ref[...] = jnp.tanh(y + bias_ref[0])


def fused_sample_and_vocode(x0, cond_h, coefs, tembs, m_real, w_in, w_out,
                            wcp, wcc, wcn, bias):
    """x0/cond_h: [Mp,F]/[Mp,H] f32 (Mp multiple of 128), coefs: [N,2] f32,
    tembs: [Np,H] f32, weights bf16.  Returns [Mp,F] f32 vocoded frames."""
    Mp, Fd = x0.shape
    Hd = cond_h.shape[1]
    N = coefs.shape[0]

    mreal_arr = jnp.asarray([m_real], jnp.int32)
    bias_arr = jnp.reshape(bias, (1,)).astype(jnp.float32)

    return pl.pallas_call(
        fused_vocoder_kernel,
        out_shape=jax.ShapeDtypeStruct((Mp, Fd), jnp.float32),
        grid=(N,),
        in_specs=[
            pl.BlockSpec(memory_space=pltpu.MemorySpace.SMEM),      # coefs
            pl.BlockSpec(memory_space=pltpu.MemorySpace.SMEM),      # m_real
            pl.BlockSpec(memory_space=pltpu.MemorySpace.SMEM),      # bias
            pl.BlockSpec(memory_space=pltpu.MemorySpace.VMEM),      # temb table
            pl.BlockSpec((Mp, Fd), lambda s: (0, 0)),               # x0
            pl.BlockSpec((Mp, Hd), lambda s: (0, 0)),               # cond_h
            pl.BlockSpec((Fd, Hd), lambda s: (0, 0)),               # w_in
            pl.BlockSpec((Hd, Fd), lambda s: (0, 0)),               # w_out
            pl.BlockSpec((Fd, Fd), lambda s: (0, 0)),               # conv W prev
            pl.BlockSpec((Fd, Fd), lambda s: (0, 0)),               # conv W cur
            pl.BlockSpec((Fd, Fd), lambda s: (0, 0)),               # conv W next
        ],
        out_specs=pl.BlockSpec((Mp, Fd), lambda s: (0, 0)),
        compiler_params=pltpu.CompilerParams(
            dimension_semantics=("arbitrary",)),
    )(coefs, mreal_arr, bias_arr, tembs, x0, cond_h, w_in, w_out, wcp, wcc, wcn)


# ----------------------------------------------------------------------------
# Banded conv weights:  out[r, j] = sum_k taps[k] * wav[r*F + j + k - pad]
# split into prev / current / next frame contributions (each F x F).
# ----------------------------------------------------------------------------
def make_banded_conv_weights(taps):
    pad = (K - 1) // 2
    c = jnp.arange(3 * F)[:, None]
    j = jnp.arange(F)[None, :]
    kk = c - F - j + pad
    wband = jnp.where((kk >= 0) & (kk < K),
                      taps[jnp.clip(kk, 0, K - 1)], 0.0).astype(jnp.bfloat16)
    return wband[:F], wband[F:2 * F], wband[2 * F:]


# ----------------------------------------------------------------------------
# Diffusion schedule (host-side numpy; no device round-trips / per-step syncs)
# ----------------------------------------------------------------------------
def _timestep_embedding_np(t, width):
    half = width // 2
    freqs = np.exp(-math.log(10000.0) * np.arange(half, dtype=np.float64) / half)
    ang = float(t) * freqs
    return np.concatenate([np.sin(ang), np.cos(ang)]).astype(np.float32)


def make_ddim_schedule(cfg):
    """Returns (coefs [N,2], tembs [Np,H]) in sampling order (step s=0 first)."""
    T = cfg["T"]
    N = cfg["N"]
    beta = np.linspace(cfg["beta_0"], cfg["beta_T"], T).astype(np.float64)
    alpha_bar = np.cumprod(1.0 - beta)
    idx = np.round(np.linspace(0.0, T - 1, N)).astype(np.int64)

    Np = -(-N // 8) * 8                           # pad rows to a sublane tile
    coefs = np.zeros((N, 2), np.float32)
    tembs = np.zeros((Np, H), np.float32)
    for s in range(N):
        i = N - 1 - s                              # DDIM goes from high t to low
        t = int(idx[i])
        ab_t = alpha_bar[t]
        ab_prev = alpha_bar[int(idx[i - 1])] if i > 0 else 1.0
        c1 = math.sqrt(ab_prev / ab_t)
        c2 = math.sqrt(1.0 - ab_prev) - c1 * math.sqrt(1.0 - ab_t)
        coefs[s, 0] = c1
        coefs[s, 1] = c2
        tembs[s] = _timestep_embedding_np(t, H)
    return jnp.asarray(coefs), jnp.asarray(tembs)


# ----------------------------------------------------------------------------
# Jitted device-side forward core (batch size is 1, as in the torch forward)
# ----------------------------------------------------------------------------
@partial(jax.jit, static_argnames=("samples_per_code",))
def _vocoder_core(codes, ref, coefs, tembs, noise_key, params, *,
                  samples_per_code):
    B, T = ref.shape
    NF = T // F
    M = B * NF
    codes_per_frame = F // samples_per_code

    # --- conditioning (glue: embedding lookup + per-frame pooling) -----------
    emb = params["embed"][codes]                                      # [B,L,D]
    cond_codes = emb.reshape(B, NF, codes_per_frame, D).mean(axis=2)  # [B,NF,D]
    ref_frames = ref.reshape(B, NF, F)
    cond = cond_codes + jnp.einsum("bnf,fd->bnd", ref_frames, params["w_ref"])
    cond = cond.reshape(M, D)
    # Step-invariant part of the denoiser hidden, hoisted out of the DDIM loop.
    cond_h = jnp.dot(cond, params["w_c"]).astype(jnp.float32)         # [M,H]

    # --- x_T noise; pad frame rows to a multiple of 128 (full MXU tile) ------
    x0 = jax.random.normal(noise_key, (M, F), dtype=jnp.float32)
    Mp = max(128, -(-M // 128) * 128)
    if Mp != M:
        x0 = jnp.pad(x0, ((0, Mp - M), (0, 0)))
        cond_h = jnp.pad(cond_h, ((0, Mp - M), (0, 0)))

    # --- weights (bf16 MXU operands) ------------------------------------------
    w_in = params["w_in"].astype(jnp.bfloat16)
    w_out = params["w_out"].astype(jnp.bfloat16)
    wcp, wcc, wcn = make_banded_conv_weights(params["hifigan_w"][:K])
    bias = params["hifigan_w"][K]

    # --- fused DDIM sampling + HifiGAN conv (single pallas_call) --------------
    frames = fused_sample_and_vocode(x0, cond_h, coefs, tembs, M,
                                     w_in, w_out, wcp, wcc, wcn, bias)
    wav = frames[:M].reshape(B, T)
    return wav[0]


# ----------------------------------------------------------------------------
# Vocoder forward (mirrors Vocoder.forward)
# ----------------------------------------------------------------------------
def vocoder_forward(codes, speaker_id, ref_audio, cfg, params, noise_key):
    # --- code preprocessing, exactly as in the torch forward (host-side) -----
    if isinstance(codes, str):
        codes = [int(c) for c in codes.strip(" ").split()]
    if isinstance(codes[0], str):
        codes = [int(c) for c in codes]
    assert len(codes) > 0
    codes_np = np.repeat(np.asarray(codes, dtype=np.int32), 2)  # repeat_interleave(2)
    L = int(codes_np.shape[0])
    align = L * cfg["sampling_rate"] // cfg["km_rate"]
    # synthetic frame-based denoiser constraint (T must be a whole # of frames)
    assert align % F == 0, "codes length must produce a whole number of frames"

    ref_np = np.asarray(ref_audio, dtype=np.float32)
    if ref_np.shape[0] >= align:
        ref_np = ref_np[:align]
    else:
        ref_np = np.pad(ref_np, (0, align - ref_np.shape[0]))
    assert ref_np.shape[0] == align

    # --- static noise schedule (numpy; no per-step host syncs) ---------------
    coefs, tembs = make_ddim_schedule(cfg)
    samples_per_code = cfg["sampling_rate"] // cfg["km_rate"]

    codes_dev = jnp.asarray(codes_np)[None, :]       # [1, L]
    ref_dev = jnp.asarray(ref_np)[None, :]           # [1, T]

    out = _vocoder_core(codes_dev, ref_dev, coefs, tembs, noise_key, params,
                        samples_per_code=samples_per_code)
    return out.squeeze()


# ----------------------------------------------------------------------------
# Deterministic parameter / input construction
# ----------------------------------------------------------------------------
def make_params(key):
    k1, k2, k3, k4, k5, k6 = jax.random.split(key, 6)
    return {
        "embed": jax.random.normal(k1, (V, D), jnp.float32) * 0.1,
        "w_ref": jax.random.normal(k2, (F, D), jnp.float32) * 0.05,
        "w_in": jax.random.normal(k3, (F, H), jnp.float32) * 0.05,
        "w_c": jax.random.normal(k4, (D, H), jnp.float32) * 0.05,
        "w_out": jax.random.normal(k5, (H, F), jnp.float32) * 0.05,
        "hifigan_w": jnp.concatenate(
            [jax.random.normal(k6, (K,), jnp.float32) * 0.2,
             jnp.zeros((1,), jnp.float32)]),                          # [K + bias]
    }


if __name__ == "__main__":
    key = jax.random.PRNGKey(0)
    kp, kc, kr, kn = jax.random.split(key, 4)

    params = make_params(kp)

    # deterministic "codes" (unit indices) and synthetic reference audio
    codes = [int(c) for c in jax.random.randint(kc, (16,), 0, V)]     # 16 codes
    ref_audio = (jax.random.uniform(kr, (900,), jnp.float32) * 2.0 - 1.0) * 0.95

    wav = vocoder_forward(codes, speaker_id=0, ref_audio=ref_audio,
                          cfg=CFG, params=params, noise_key=kn)
    wav = jax.block_until_ready(wav)

    assert wav.shape == (len(codes) * 2 * CFG["sampling_rate"] // CFG["km_rate"],)
    assert wav.dtype == jnp.float32
    assert bool(jnp.all(jnp.isfinite(wav)))
    print("KERNEL_OK")
</pallas_src>

<mosaic_0001>
module attributes {stable_mosaic.version = 11 : i64} {
  func.func @fused_vocoder_kernel(%arg0: i32, %arg1: memref<6x2xf32, #tpu.memory_space<smem>>, %arg2: memref<1xi32, #tpu.memory_space<smem>>, %arg3: memref<1xf32, #tpu.memory_space<smem>>, %arg4: memref<8x128xf32, #tpu.memory_space<vmem>>, %arg5: memref<128x128xf32, #tpu.memory_space<vmem>>, %arg6: memref<128x128xf32, #tpu.memory_space<vmem>>, %arg7: memref<128x128xbf16, #tpu.memory_space<vmem>>, %arg8: memref<128x128xbf16, #tpu.memory_space<vmem>>, %arg9: memref<128x128xbf16, #tpu.memory_space<vmem>>, %arg10: memref<128x128xbf16, #tpu.memory_space<vmem>>, %arg11: memref<128x128xbf16, #tpu.memory_space<vmem>>, %arg12: memref<128x128xf32, #tpu.memory_space<vmem>>) attributes {dimension_semantics = [#tpu.dimension_semantics<arbitrary>], iteration_bounds = array<i64: 6>, scalar_prefetch = 0 : i64, scratch_operands = 0 : i64, tpu.core_type = #tpu.core_type<tc>, window_params = [{transform_indices = @transform_0, window_bounds = array<i64: 6, 2>}, {transform_indices = @transform_1, window_bounds = array<i64: 1>}, {transform_indices = @transform_2, window_bounds = array<i64: 1>}, {pipeline_mode = #tpu.pipeline_mode<synchronous>, transform_indices = @transform_3, window_bounds = array<i64: 8, 128>}, {pipeline_mode = #tpu.pipeline_mode<synchronous>, transform_indices = @transform_4, window_bounds = array<i64: 128, 128>}, {pipeline_mode = #tpu.pipeline_mode<synchronous>, transform_indices = @transform_5, window_bounds = array<i64: 128, 128>}, {pipeline_mode = #tpu.pipeline_mode<synchronous>, transform_indices = @transform_6, window_bounds = array<i64: 128, 128>}, {pipeline_mode = #tpu.pipeline_mode<synchronous>, transform_indices = @transform_7, window_bounds = array<i64: 128, 128>}, {pipeline_mode = #tpu.pipeline_mode<synchronous>, transform_indices = @transform_8, window_bounds = array<i64: 128, 128>}, {pipeline_mode = #tpu.pipeline_mode<synchronous>, transform_indices = @transform_9, window_bounds = array<i64: 128, 128>}, {pipeline_mode = #tpu.pipeline_mode<synchronous>, transform_indices = @transform_10, window_bounds = array<i64: 128, 128>}, {pipeline_mode = #tpu.pipeline_mode<synchronous>, transform_indices = @transform_11, window_bounds = array<i64: 128, 128>}]} {
    %c0_i32 = arith.constant 0 : i32
    %0 = arith.cmpi eq, %arg0, %c0_i32 : i32
    %1 = arith.extui %0 : i1 to i32
    %c0_i32_0 = arith.constant 0 : i32
    %2 = arith.cmpi ne, %1, %c0_i32_0 : i32
    scf.if %2 {
      %c0_14 = arith.constant 0 : index
      %c0_15 = arith.constant 0 : index
      %32 = vector.load %arg5[%c0_14, %c0_15] : memref<128x128xf32, #tpu.memory_space<vmem>>, vector<128x128xf32>
      %c0_16 = arith.constant 0 : index
      %c0_17 = arith.constant 0 : index
      %33 = vector.load %arg12[%c0_16, %c0_17] : memref<128x128xf32, #tpu.memory_space<vmem>>, vector<128x128xf32>
      tpu.vector_store %arg12[%c0_16, %c0_17], %32 {strides = array<i32>} : memref<128x128xf32, #tpu.memory_space<vmem>>, vector<128x128xf32>,
    } else {
    }
    %c0 = arith.constant 0 : index
    %c0_1 = arith.constant 0 : index
    %3 = vector.load %arg12[%c0, %c0_1] : memref<128x128xf32, #tpu.memory_space<vmem>>, vector<128x128xf32>
    %4 = arith.truncf %3 : vector<128x128xf32> to vector<128x128xbf16>
    %c0_2 = arith.constant 0 : index
    %c0_3 = arith.constant 0 : index
    %5 = vector.load %arg7[%c0_2, %c0_3] : memref<128x128xbf16, #tpu.memory_space<vmem>>, vector<128x128xbf16>
    %cst = arith.constant dense<0.000000e+00> : vector<128x128xf32>
    %6 = tpu.matmul %4, %5, %cst {dimension_numbers = #tpu.dot_dimension_numbers<[1], [0], [0], [1], [0, 0, 1, 1], [], []>} : vector<128x128xbf16>, vector<128x128xbf16>, vector<128x128xf32> -> vector<128x128xf32>
    %c0_4 = arith.constant 0 : index
    %c0_5 = arith.constant 0 : index
    %7 = vector.load %arg6[%c0_4, %c0_5] : memref<128x128xf32, #tpu.memory_space<vmem>>, vector<128x128xf32>
    %8 = arith.addf %6, %7 : vector<128x128xf32>
    %9 = arith.index_cast %arg0 : i32 to index
    %c0_6 = arith.constant 0 : index
    %10 = vector.load %arg4[%9, %c0_6] : memref<8x128xf32, #tpu.memory_space<vmem>>, vector<1x128xf32>
    %11 = vector.broadcast %10 : vector<1x128xf32> to vector<128x128xf32>
    %12 = arith.addf %8, %11 : vector<128x128xf32>
    %13 = math.tanh %12 : vector<128x128xf32>
    %14 = arith.truncf %13 : vector<128x128xf32> to vector<128x128xbf16>
    %c0_7 = arith.constant 0 : index
    %c0_8 = arith.constant 0 : index
    %15 = vector.load %arg8[%c0_7, %c0_8] : memref<128x128xbf16, #tpu.memory_space<vmem>>, vector<128x128xbf16>
    %cst_9 = arith.constant dense<0.000000e+00> : vector<128x128xf32>
    %16 = tpu.matmul %14, %15, %cst_9 {dimension_numbers = #tpu.dot_dimension_numbers<[1], [0], [0], [1], [0, 0, 1, 1], [], []>} : vector<128x128xbf16>, vector<128x128xbf16>, vector<128x128xf32> -> vector<128x128xf32>
    %17 = arith.index_cast %arg0 : i32 to index
    %c0_10 = arith.constant 0 : index
    %18 = memref.load %arg1[%17, %c0_10] : memref<6x2xf32, #tpu.memory_space<smem>>
    %19 = vector.broadcast %18 : f32 to vector<128x128xf32>
    %20 = arith.mulf %19, %3 : vector<128x128xf32>
    %21 = arith.index_cast %arg0 : i32 to index
    %c1 = arith.constant 1 : index
    %22 = memref.load %arg1[%21, %c1] : memref<6x2xf32, #tpu.memory_space<smem>>
    %23 = vector.broadcast %22 : f32 to vector<128x128xf32>
    %24 = arith.mulf %23, %16 : vector<128x128xf32>
    %25 = arith.addf %20, %24 : vector<128x128xf32>
    %c5_i32 = arith.constant 5 : i32
    %26 = arith.cmpi ne, %arg0, %c5_i32 : i32
    %27 = arith.extui %26 : i1 to i32
    %c0_i32_11 = arith.constant 0 : i32
    %28 = arith.cmpi ne, %27, %c0_i32_11 : i32
    scf.if %28 {
      %c0_14 = arith.constant 0 : index
      %c0_15 = arith.constant 0 : index
      %32 = vector.load %arg12[%c0_14, %c0_15] : memref<128x128xf32, #tpu.memory_space<vmem>>, vector<128x128xf32>
      tpu.vector_store %arg12[%c0_14, %c0_15], %25 {strides = array<i32>} : memref<128x128xf32, #tpu.memory_space<vmem>>, vector<128x128xf32>,
    } else {
    }
    %c5_i32_12 = arith.constant 5 : i32
    %29 = arith.cmpi eq, %arg0, %c5_i32_12 : i32
    %30 = arith.extui %29 : i1 to i32
    %c0_i32_13 = arith.constant 0 : i32
    %31 = arith.cmpi ne, %30, %c0_i32_13 : i32
    scf.if %31 {
      %32 = tpu.iota {dimensions = array<i32: 0>} : vector<128x128xi32>
      %c0_14 = arith.constant 0 : index
      %33 = memref.load %arg2[%c0_14] : memref<1xi32, #tpu.memory_space<smem>>
      %34 = vector.broadcast %33 : i32 to vector<128x128xi32>
      %35 = arith.cmpi slt, %32, %34 : vector<128x128xi32>
      %cst_15 = arith.constant 0.000000e+00 : f32
      %36 = vector.broadcast %cst_15 : f32 to vector<128x128xf32>
      %37 = arith.select %35, %25, %36 : vector<128x128xi1>, vector<128x128xf32>
      %c0_i32_16 = arith.constant 0 : i32
      %38 = vector.broadcast %c0_i32_16 : i32 to vector<128x128xi32>
      %39 = arith.cmpi eq, %32, %38 : vector<128x128xi32>
      %c1_i32 = arith.constant 1 : i32
      %40 = tpu.dynamic_rotate %37 by %c1_i32 dim 0 : vector<128x128xf32>, i32 -> vector<128x128xf32>
      %cst_17 = arith.constant 0.000000e+00 : f32
      %41 = vector.broadcast %cst_17 : f32 to vector<128x128xf32>
      %42 = arith.select %39, %41, %40 : vector<128x128xi1>, vector<128x128xf32>
      %c127_i32 = arith.constant 127 : i32
      %43 = vector.broadcast %c127_i32 : i32 to vector<128x128xi32>
      %44 = arith.cmpi eq, %32, %43 : vector<128x128xi32>
      %c127_i32_18 = arith.constant 127 : i32
      %45 = tpu.dynamic_rotate %37 by %c127_i32_18 dim 0 : vector<128x128xf32>, i32 -> vector<128x128xf32>
      %cst_19 = arith.constant 0.000000e+00 : f32
      %46 = vector.broadcast %cst_19 : f32 to vector<128x128xf32>
      %47 = arith.select %44, %46, %45 : vector<128x128xi1>, vector<128x128xf32>
      %48 = arith.truncf %42 : vector<128x128xf32> to vector<128x128xbf16>
      %c0_20 = arith.constant 0 : index
      %c0_21 = arith.constant 0 : index
      %49 = vector.load %arg9[%c0_20, %c0_21] : memref<128x128xbf16, #tpu.memory_space<vmem>>, vector<128x128xbf16>
      %cst_22 = arith.constant dense<0.000000e+00> : vector<128x128xf32>
      %50 = tpu.matmul %48, %49, %cst_22 {dimension_numbers = #tpu.dot_dimension_numbers<[1], [0], [0], [1], [0, 0, 1, 1], [], []>} : vector<128x128xbf16>, vector<128x128xbf16>, vector<128x128xf32> -> vector<128x128xf32>
      %51 = arith.truncf %37 : vector<128x128xf32> to vector<128x128xbf16>
      %c0_23 = arith.constant 0 : index
      %c0_24 = arith.constant 0 : index
      %52 = vector.load %arg10[%c0_23, %c0_24] : memref<128x128xbf16, #tpu.memory_space<vmem>>, vector<128x128xbf16>
      %cst_25 = arith.constant dense<0.000000e+00> : vector<128x128xf32>
      %53 = tpu.matmul %51, %52, %cst_25 {dimension_numbers = #tpu.dot_dimension_numbers<[1], [0], [0], [1], [0, 0, 1, 1], [], []>} : vector<128x128xbf16>, vector<128x128xbf16>, vector<128x128xf32> -> vector<128x128xf32>
      %54 = arith.addf %50, %53 : vector<128x128xf32>
      %55 = arith.truncf %47 : vector<128x128xf32> to vector<128x128xbf16>
      %c0_26 = arith.constant 0 : index
      %c0_27 = arith.constant 0 : index
      %56 = vector.load %arg11[%c0_26, %c0_27] : memref<128x128xbf16, #tpu.memory_space<vmem>>, vector<128x128xbf16>
      %cst_28 = arith.constant dense<0.000000e+00> : vector<128x128xf32>
      %57 = tpu.matmul %55, %56, %cst_28 {dimension_numbers = #tpu.dot_dimension_numbers<[1], [0], [0], [1], [0, 0, 1, 1], [], []>} : vector<128x128xbf16>, vector<128x128xbf16>, vector<128x128xf32> -> vector<128x128xf32>
      %58 = arith.addf %54, %57 : vector<128x128xf32>
      %c0_29 = arith.constant 0 : index
      %59 = memref.load %arg3[%c0_29] : memref<1xf32, #tpu.memory_space<smem>>
      %60 = vector.broadcast %59 : f32 to vector<128x128xf32>
      %61 = arith.addf %58, %60 : vector<128x128xf32>
      %62 = math.tanh %61 : vector<128x128xf32>
      %c0_30 = arith.constant 0 : index
      %c0_31 = arith.constant 0 : index
      %63 = vector.load %arg12[%c0_30, %c0_31] : memref<128x128xf32, #tpu.memory_space<vmem>>, vector<128x128xf32>
      tpu.vector_store %arg12[%c0_30, %c0_31], %62 {strides = array<i32>} : memref<128x128xf32, #tpu.memory_space<vmem>>, vector<128x128xf32>,
    } else {
    }
    return
  }
  func.func @transform_0(%arg0: i32) -> (i32, i32) {
    %c0_i32 = arith.constant 0 : i32
    %c0_i32_0 = arith.constant 0 : i32
    %c0_i32_1 = arith.constant 0 : i32
    return %c0_i32, %c0_i32_0 : i32, i32
  }
  func.func @transform_1(%arg0: i32) -> i32 {
    %c0_i32 = arith.constant 0 : i32
    %c0_i32_0 = arith.constant 0 : i32
    return %c0_i32 : i32
  }
  func.func @transform_2(%arg0: i32) -> i32 {
    %c0_i32 = arith.constant 0 : i32
    %c0_i32_0 = arith.constant 0 : i32
    return %c0_i32 : i32
  }
  func.func @transform_3(%arg0: i32) -> (i32, i32) {
    %c0_i32 = arith.constant 0 : i32
    %c0_i32_0 = arith.constant 0 : i32
    %c0_i32_1 = arith.constant 0 : i32
    return %c0_i32, %c0_i32_0 : i32, i32
  }
  func.func @transform_4(%arg0: i32) -> (i32, i32) {
    %c0_i32 = arith.constant 0 : i32
    %c0_i32_0 = arith.constant 0 : i32
    %c0_i32_1 = arith.constant 0 : i32
    return %c0_i32, %c0_i32_0 : i32, i32
  }
  func.func @transform_5(%arg0: i32) -> (i32, i32) {
    %c0_i32 = arith.constant 0 : i32
    %c0_i32_0 = arith.constant 0 : i32
    %c0_i32_1 = arith.constant 0 : i32
    return %c0_i32, %c0_i32_0 : i32, i32
  }
  func.func @transform_6(%arg0: i32) -> (i32, i32) {
    %c0_i32 = arith.constant 0 : i32
    %c0_i32_0 = arith.constant 0 : i32
    %c0_i32_1 = arith.constant 0 : i32
    return %c0_i32, %c0_i32_0 : i32, i32
  }
  func.func @transform_7(%arg0: i32) -> (i32, i32) {
    %c0_i32 = arith.constant 0 : i32
    %c0_i32_0 = arith.constant 0 : i32
    %c0_i32_1 = arith.constant 0 : i32
    return %c0_i32, %c0_i32_0 : i32, i32
  }
  func.func @transform_8(%arg0: i32) -> (i32, i32) {
    %c0_i32 = arith.constant 0 : i32
    %c0_i32_0 = arith.constant 0 : i32
    %c0_i32_1 = arith.constant 0 : i32
    return %c0_i32, %c0_i32_0 : i32, i32
  }
  func.func @transform_9(%arg0: i32) -> (i32, i32) {
    %c0_i32 = arith.constant 0 : i32
    %c0_i32_0 = arith.constant 0 : i32
    %c0_i32_1 = arith.constant 0 : i32
    return %c0_i32, %c0_i32_0 : i32, i32
  }
  func.func @transform_10(%arg0: i32) -> (i32, i32) {
    %c0_i32 = arith.constant 0 : i32
    %c0_i32_0 = arith.constant 0 : i32
    %c0_i32_1 = arith.constant 0 : i32
    return %c0_i32, %c0_i32_0 : i32, i32
  }
  func.func @transform_11(%arg0: i32) -> (i32, i32) {
    %c0_i32 = arith.constant 0 : i32
    %c0_i32_0 = arith.constant 0 : i32
    %c0_i32_1 = arith.constant 0 : i32
    return %c0_i32, %c0_i32_0 : i32, i32
  }
}

</mosaic_0001>

<bundles_post_ra>
// kernel: _vocoder_core.1
= control target key start
LH: loop header
LB: loop body
LE: loop exit
PB: predicated region body
PF: predicated region fallthrough
CT: control target
= control target key end

     0   :  { %s2886_s0 = inlined_call_operand.vmem [shape: f32[6,2], index: 0, kind: input, shape index: {}]   ;;  %s2887_s1 = inlined_call_operand.<no memory space> [shape: s32[1], index: 1, kind: input, shape index: {}]   ;;  %s2888_s2 = inlined_call_operand.<no memory space> [shape: f32[1], index: 2, kind: input, shape index: {}]   ;;  %s2889_s3 = inlined_call_operand.vmem [shape: f32[8,128], index: 3, kind: input, shape index: {}]   ;;  %s2890_s4 = inlined_call_operand.vmem [shape: f32[128,128], index: 4, kind: input, shape index: {}]   ;;  %s2891_s5 = inlined_call_operand.vmem [shape: f32[128,128], index: 5, kind: input, shape index: {}]   ;;  %s2892_s6 = inlined_call_operand.vmem [shape: bf16[128,128], index: 6, kind: input, shape index: {}]   ;;  %s2893_s7 = inlined_call_operand.vmem [shape: bf16[128,128], index: 7, kind: input, shape index: {}]   ;;  %s2894_s8 = inlined_call_operand.vmem [shape: bf16[128,128], index: 8, kind: input, shape index: {}]   ;;  %s2895_s9 = inlined_call_operand.vmem [shape: bf16[128,128], index: 9, kind: input, shape index: {}]   ;;  %s2896_s10 = inlined_call_operand.vmem [shape: bf16[128,128], index: 10, kind: input, shape index: {}]   ;;  %s2897_s11 = inlined_call_operand.vmem [shape: f32[128,128], index: 11, kind: output, shape index: {}]  }
   0x1   :  { %16 = sst [smem:[#allocation2]] %s2887_s1 }
   0x2   :  { %17 = sst [smem:[#allocation3]] %s2888_s2 }
   0x3   :  { %18 = vsyncpa [#allocation5], 0  ;;  %s1895_s21 = smov 0  }
   0x4 LB: > { %s1901_s22 = sadd.s32 4294967295, %s1825_s21   ;;  %p1431_p0 = scmp.ge.s32.totalorder %s1825_s21, 1  ;;  %s1825_s21 = sphi %s1895_s21, %s24_s21  }
   0x5   : > { %p281_p1 = scmp.lt.s32.totalorder %s1825_s21, 7  ;;  %p1432_p2 = scmp.ne.s32.totalorder %s1901_s22, 0 }
   0x6   : > { %s293_s23 = sshll.u32 %s2886_s0, 4  ;;  %p1723_p4 = scmp.eq.s32.totalorder %s1901_s22, 0  ;;  %s294_s23 = int_to_ptr.vmem [resolvable:$true] %s293_s23 }
   0x7   : > { %p282_p3 = pnand %p1431_p0, %p281_p1  ;;  %s1827_s24 = smov [#allocation4]  }
   0x9   : > { %p1719_p5 = pneg %p282_p3  ;;  %336 = sbr.rel (%p282_p3) target bundleno = 704 (0x2c0), region = 64 }
   0xb   : > { %p1720_p6 = pnand %p1723_p4, %p1719_p5 }
   0xd   : > { %1722 = dma.vmem_to_smem (!%p1720_p6), %s294_s23, 128, %s1827_s24, [#allocation5]  }
   0xe   : > { %1820 = dma.done.wait (%p1723_p4), [#allocation5], 128  }
   0xf   : > { %1822 = vsyncadd (%p1723_p4), [#allocation5], 4294967168 }
  0x10   : > { %343 = sfence }
  0x11   : > { %371 = sbr.rel (%p1432_p2) target bundleno = 39 (0x27), region = 72 }
  0x16   : > { %v372_v0 = vld [vmem:[%s2890_s4] sm:$0xff]  ;;  %v373_v1 = vld [vmem:[%s2890_s4 + $0x8] sm:$0xff]  ;;  %v374_v2 = vld [vmem:[%s2890_s4 + $0x10] sm:$0xff] }
  0x17   : > { %388 = vst [vmem:[%s2897_s11] sm:$0xff] %v372_v0  ;;  %v375_v3 = vld [vmem:[%s2890_s4 + $0x18] sm:$0xff]  ;;  %v376_v4 = vld [vmem:[%s2890_s4 + $0x20] sm:$0xff]  ;;  %v377_v5 = vld [vmem:[%s2890_s4 + $0x28] sm:$0xff] }
  0x18   : > { %389 = vst [vmem:[%s2897_s11 + $0x8] sm:$0xff] %v373_v1  ;;  %v378_v6 = vld [vmem:[%s2890_s4 + $0x30] sm:$0xff]  ;;  %v379_v7 = vld [vmem:[%s2890_s4 + $0x38] sm:$0xff]  ;;  %v380_v8 = vld [vmem:[%s2890_s4 + $0x40] sm:$0xff] }
  0x19   : > { %390 = vst [vmem:[%s2897_s11 + $0x10] sm:$0xff] %v374_v2  ;;  %v381_v9 = vld [vmem:[%s2890_s4 + $0x48] sm:$0xff]  ;;  %v382_v10 = vld [vmem:[%s2890_s4 + $0x50] sm:$0xff]  ;;  %v383_v11 = vld [vmem:[%s2890_s4 + $0x58] sm:$0xff] }
  0x1a   : > { %391 = vst [vmem:[%s2897_s11 + $0x18] sm:$0xff] %v375_v3  ;;  %v384_v12 = vld [vmem:[%s2890_s4 + $0x60] sm:$0xff]  ;;  %v385_v13 = vld [vmem:[%s2890_s4 + $0x68] sm:$0xff]  ;;  %v386_v14 = vld [vmem:[%s2890_s4 + $0x70] sm:$0xff] }
  0x1b   : > { %392 = vst [vmem:[%s2897_s11 + $0x20] sm:$0xff] %v376_v4  ;;  %v387_v15 = vld [vmem:[%s2890_s4 + $0x78] sm:$0xff] }
  0x1c   : > { %393 = vst [vmem:[%s2897_s11 + $0x28] sm:$0xff] %v377_v5 }
  0x1d   : > { %394 = vst [vmem:[%s2897_s11 + $0x30] sm:$0xff] %v378_v6 }
  0x1e   : > { %395 = vst [vmem:[%s2897_s11 + $0x38] sm:$0xff] %v379_v7 }
  0x1f   : > { %396 = vst [vmem:[%s2897_s11 + $0x40] sm:$0xff] %v380_v8 }
  0x20   : > { %397 = vst [vmem:[%s2897_s11 + $0x48] sm:$0xff] %v381_v9 }
  0x21   : > { %398 = vst [vmem:[%s2897_s11 + $0x50] sm:$0xff] %v382_v10 }
  0x22   : > { %399 = vst [vmem:[%s2897_s11 + $0x58] sm:$0xff] %v383_v11 }
  0x23   : > { %400 = vst [vmem:[%s2897_s11 + $0x60] sm:$0xff] %v384_v12 }
  0x24   : > { %401 = vst [vmem:[%s2897_s11 + $0x68] sm:$0xff] %v385_v13 }
  0x25   : > { %402 = vst [vmem:[%s2897_s11 + $0x70] sm:$0xff] %v386_v14 }
  0x26   : > { %403 = vst [vmem:[%s2897_s11 + $0x78] sm:$0xff] %v387_v15 }
  0x27 PF: > { %v1640_v16 = vld [vmem:[%s2892_s6 + $0x38] sm:$0xff]  ;;  %v1639_v17 = vld [vmem:[%s2892_s6 + $0x30] sm:$0xff]  ;;  %v1638_v18 = vld [vmem:[%s2892_s6 + $0x28] sm:$0xff]  ;;  %s557_s20 = scalar_lea.vmem %s2889_s3, %s1901_s22  ;;  %s1500_s1 = sshll.u32 %s1901_s22, 7 }
  0x28   : > { %508 = vmatpush.bf16.msra.mxu0 %v1640_v16  ;;  %1675 = vmatpush.bf16.msra.mxu2 %v1640_v16  ;;  %v1637_v19 = vld [vmem:[%s2892_s6 + $0x20] sm:$0xff]  ;;  %v1636_v20 = vld [vmem:[%s2892_s6 + $0x18] sm:$0xff]  ;;  %v1635_v21 = vld [vmem:[%s2892_s6 + $0x10] sm:$0xff]  ;;  %s732_s2 = sadd.s32 1, %s1500_s1  ;;  %s714_s23 = sld [smem:[#allocation4 + %s1500_s1]] }
  0x29   : > { %v1634_v22 = vld [vmem:[%s2892_s6 + $0x8] sm:$0xff]  ;;  %v1633_v23 = vld [vmem:[%s2892_s6] sm:$0xff]  ;;  %v2061_v30 = vld [vmem:[%s2897_s11 + $0x10] sm:$0xff]  ;;  %s733_s24 = sld [smem:[#allocation4 + %s732_s2]]  ;;  %p1501_p7 = scmp.eq.s32.totalorder %s1901_s22, 5 }
  0x2a   : > { %v2033_v24 = vld [vmem:[%s2897_s11] sm:$0xff]  ;;  %v2038_v25 = vld [vmem:[%s2897_s11 + $0x8] sm:$0xff]  ;;  %v2066_v31 = vld [vmem:[%s2897_s11 + $0x18] sm:$0xff] }
  0x2b   : > { %v2043_v26 = vld [vmem:[%s2897_s11 + $0x40] sm:$0xff]  ;;  %v2048_v27 = vld [vmem:[%s2897_s11 + $0x48] sm:$0xff]  ;;  %v420_v28 = vpack.c.bf16 %v2038_v25, %v2033_v24  ;;  %v2071_v32 = vld [vmem:[%s2897_s11 + $0x50] sm:$0xff]  ;;  %v421_v34 = vpack.c.bf16 %v2066_v31, %v2061_v30 }
  0x2c   : > { %509 = vmatpush.bf16.msra.mxu0 %v1639_v17  ;;  %1676 = vmatpush.bf16.msra.mxu2 %v1639_v17  ;;  %v424_v29 = vpack.c.bf16 %v2048_v27, %v2043_v26  ;;  %v2076_v33 = vld [vmem:[%s2897_s11 + $0x58] sm:$0xff]  ;;  %v1647_v37 = vld [vmem:[%s2893_s7 + $0x30] sm:$0xff]  ;;  %v1646_v38 = vld [vmem:[%s2893_s7 + $0x28] sm:$0xff] }
  0x2d   : > { %v425_v35 = vpack.c.bf16 %v2076_v33, %v2071_v32  ;;  %v1648_v36 = vld [vmem:[%s2893_s7 + $0x38] sm:$0xff]  ;;  %v2094_v39 = vld [vmem:[%s2897_s11 + $0x20] sm:$0xff]  ;;  %v2099_v40 = vld [vmem:[%s2897_s11 + $0x28] sm:$0xff] }
  0x2e   : > { %664 = vmatpush.bf16.msra.mxu1 %v1648_v36  ;;  %1683 = vmatpush.bf16.msra.mxu3 %v1648_v36  ;;  %v2104_v41 = vld [vmem:[%s2897_s11 + $0x60] sm:$0xff]  ;;  %v2109_v42 = vld [vmem:[%s2897_s11 + $0x68] sm:$0xff]  ;;  %v422_v43 = vpack.c.bf16 %v2099_v40, %v2094_v39  ;;  %v2118_v45 = vld [vmem:[%s2897_s11 + $0x30] sm:$0xff] }
  0x2f   : > { %v426_v44 = vpack.c.bf16 %v2109_v42, %v2104_v41  ;;  %v2123_v46 = vld [vmem:[%s2897_s11 + $0x38] sm:$0xff]  ;;  %v2128_v47 = vld [vmem:[%s2897_s11 + $0x70] sm:$0xff]  ;;  %v1645_v51 = vld [vmem:[%s2893_s7 + $0x20] sm:$0xff] }
  0x30   : > { %510 = vmatpush.bf16.msra.mxu0 %v1638_v18  ;;  %1677 = vmatpush.bf16.msra.mxu2 %v1638_v18  ;;  %v2133_v48 = vld [vmem:[%s2897_s11 + $0x78] sm:$0xff]  ;;  %v423_v49 = vpack.c.bf16 %v2123_v46, %v2118_v45  ;;  %v1643_v53 = vld [vmem:[%s2893_s7 + $0x10] sm:$0xff]  ;;  %v1642_v54 = vld [vmem:[%s2893_s7 + $0x8] sm:$0xff] }
  0x31   : > { %v427_v50 = vpack.c.bf16 %v2133_v48, %v2128_v47  ;;  %v1644_v52 = vld [vmem:[%s2893_s7 + $0x18] sm:$0xff]  ;;  %v1641_v55 = vld [vmem:[%s2893_s7] sm:$0xff]  ;;  %v445_v61 = vld [vmem:[%s2891_s5 + $0x8] sm:$0xff] }
  0x32   : > { %665 = vmatpush.bf16.msra.mxu1 %v1647_v37  ;;  %1684 = vmatpush.bf16.msra.mxu3 %v1647_v37  ;;  %v444_v56 = vld [vmem:[%s2891_s5] sm:$0xff]  ;;  %v453_v4 = vld [vmem:[%s2891_s5 + $0x48] sm:$0xff]  ;;  %v446_v8 = vld [vmem:[%s2891_s5 + $0x10] sm:$0xff] }
  0x33   : > { %v2162_v59 = vld [vmem:[%s557_s20] ss:$0 sm:$0xff]  ;;  %v447_v16 = vld [vmem:[%s2891_s5 + $0x18] sm:$0xff]  ;;  %v454_v18 = vld [vmem:[%s2891_s5 + $0x50] sm:$0xff] }
  0x34   : > { %511 = vmatpush.bf16.msra.mxu0 %v1637_v19  ;;  %1678 = vmatpush.bf16.msra.mxu2 %v1637_v19  ;;  %v452_v63 = vld [vmem:[%s2891_s5 + $0x40] sm:$0xff] }
  0x36   : > { %666 = vmatpush.bf16.msra.mxu1 %v1646_v38  ;;  %1685 = vmatpush.bf16.msra.mxu3 %v1646_v38  ;;  %v448_v38 = vld [vmem:[%s2891_s5 + $0x20] sm:$0xff] }
  0x38   : > { %512 = vmatpush.bf16.msra.mxu0 %v1636_v20  ;;  %1679 = vmatpush.bf16.msra.mxu2 %v1636_v20 }
  0x3a   : > { %667 = vmatpush.bf16.msra.mxu1 %v1645_v51  ;;  %1686 = vmatpush.bf16.msra.mxu3 %v1645_v51 }
  0x3c   : > { %513 = vmatpush.bf16.msra.mxu0 %v1635_v21  ;;  %1680 = vmatpush.bf16.msra.mxu2 %v1635_v21 }
  0x3e   : > { %668 = vmatpush.bf16.msra.mxu1 %v1644_v52  ;;  %1687 = vmatpush.bf16.msra.mxu3 %v1644_v52 }
  0x40   : > { %514 = vmatpush.bf16.msra.mxu0 %v1634_v22  ;;  %1681 = vmatpush.bf16.msra.mxu2 %v1634_v22 }
  0x42   : > { %669 = vmatpush.bf16.msra.mxu1 %v1643_v53  ;;  %1688 = vmatpush.bf16.msra.mxu3 %v1643_v53 }
  0x44   : > { %515 = vmatpush.bf16.msra.mxu0 %v1633_v23  ;;  %1682 = vmatpush.bf16.msra.mxu2 %v1633_v23 }
  0x46   : > { %670 = vmatpush.bf16.msra.mxu1 %v1642_v54  ;;  %1689 = vmatpush.bf16.msra.mxu3 %v1642_v54  ;;  %v449_v54 = vld [vmem:[%s2891_s5 + $0x28] sm:$0xff] }
  0x47   : > { %516 = vmatmul.bf16.vlgmr.msra.gmra.mxu0 %v420_v28  ;;  %536 = vmatmul.bf16.vlgmr.msra.gmra.mxu2 %v424_v29 }
  0x4a   : > { %671 = vmatpush.bf16.msra.mxu1 %v1641_v55  ;;  %1690 = vmatpush.bf16.msra.mxu3 %v1641_v55 }
  0x57   : > { %521 = vmatmul.bf16.gmra.mxu0 %v421_v34  ;;  %541 = vmatmul.bf16.gmra.mxu2 %v425_v35  ;;  %v455_v34 = vld [vmem:[%s2891_s5 + $0x58] sm:$0xff] }
  0x67   : > { %526 = vmatmul.bf16.gmra.mxu0 %v422_v43  ;;  %546 = vmatmul.bf16.gmra.mxu2 %v426_v44 }
  0x77   : > { %531 = vmatmul.bf16.gmra.mxu0 %v423_v49  ;;  %551 = vmatmul.bf16.gmra.mxu2 %v427_v50 }
  0xc4   : > { %v517_v57 = vpop.f32.mrf.mxu0 }
  0xc5   : > { %v518_v58 = vadd.f32 %v517_v57, %v444_v56  ;;  %v456_v56 = vld [vmem:[%s2891_s5 + $0x60] sm:$0xff] }
  0xc7   : > { %v560_v62 = vadd.f32 %v2162_v59, %v518_v58 }
  0xc9   : > { %1736 = vtanh.f32 %v560_v62 }
  0xca   : > { %v537_v60 = vpop.f32.mrf.mxu2 }
  0xcb   : > { %v538_v2 = vadd.f32 %v537_v60, %v452_v63 }
  0xcc   : > { %v519_v0 = vpop.f32.mrf.mxu0 }
  0xcd   : > { %v520_v1 = vadd.f32 %v519_v0, %v445_v61  ;;  %v568_v5 = vadd.f32 %v2162_v59, %v538_v2 }
  0xcf   : > { %v561_v3 = vadd.f32 %v2162_v59, %v520_v1  ;;  %v1737_v10 = vpop.eup %1736  ;;  %v457_v1 = vld [vmem:[%s2891_s5 + $0x68] sm:$0xff] }
  0xd1   : > { %1738 = vtanh.f32 %v561_v3 }
  0xd2   : > { %v539_v6 = vpop.f32.mrf.mxu2  ;;  %1740 = vtanh.f32 %v568_v5  ;;  %v450_v5 = vld [vmem:[%s2891_s5 + $0x30] sm:$0xff] }
  0xd3   : > { %v540_v7 = vadd.f32 %v539_v6, %v453_v4 }
  0xd4   : > { %v522_v9 = vpop.f32.mrf.mxu0 }
  0xd5   : > { %v569_v11 = vadd.f32 %v2162_v59, %v540_v7  ;;  %v523_v13 = vadd.f32 %v522_v9, %v446_v8 }
  0xd7   : > { %v1739_v12 = vpop.eup %1738  ;;  %1742 = vtanh.f32 %v569_v11  ;;  %v562_v17 = vadd.f32 %v2162_v59, %v523_v13  ;;  %v451_v13 = vld [vmem:[%s2891_s5 + $0x38] sm:$0xff] }
  0xd8   : > { %v592_v14 = vpack.c.bf16 %v1739_v12, %v1737_v10  ;;  %v1741_v19 = vpop.eup %1740 }
  0xd9   : > { %1744 = vtanh.f32 %v562_v17 }
  0xda   : > { %v542_v15 = vpop.f32.mrf.mxu2  ;;  %672 = vmatmul.bf16.vlgmr.msra.gmra.mxu1 %v592_v14 }
  0xdb   : > { %v543_v23 = vadd.f32 %v542_v15, %v454_v18  ;;  %v458_v15 = vld [vmem:[%s2891_s5 + $0x70] sm:$0xff] }
  0xdc   : > { %v524_v20 = vpop.f32.mrf.mxu0 }
  0xdd   : > { %v1743_v21 = vpop.eup %1742  ;;  %v525_v22 = vadd.f32 %v524_v20, %v447_v16  ;;  %v570_v35 = vadd.f32 %v2162_v59, %v543_v23  ;;  %v459_v23 = vld [vmem:[%s2891_s5 + $0x78] sm:$0xff] }
  0xde   : > { %v596_v28 = vpack.c.bf16 %v1743_v21, %v1741_v19 }
  0xdf   : > { %v563_v29 = vadd.f32 %v2162_v59, %v525_v22  ;;  %v1745_v44 = vpop.eup %1744 }
  0xe0   : > { %692 = vmatmul.bf16.vlgmr.msra.gmra.mxu3 %v596_v28 }
  0xe1   : > { %1746 = vtanh.f32 %v563_v29 }
  0xe2   : > { %v544_v36 = vpop.f32.mrf.mxu2  ;;  %1748 = vtanh.f32 %v570_v35 }
  0xe3   : > { %v545_v37 = vadd.f32 %v544_v36, %v455_v34 }
  0xe4   : > { %v527_v43 = vpop.f32.mrf.mxu0 }
  0xe5   : > { %v571_v49 = vadd.f32 %v2162_v59, %v545_v37  ;;  %v528_v51 = vadd.f32 %v527_v43, %v448_v38 }
  0xe7   : > { %v1747_v50 = vpop.eup %1746  ;;  %1750 = vtanh.f32 %v571_v49  ;;  %v564_v55 = vadd.f32 %v2162_v59, %v528_v51  ;;  %v2226_v51 = vstv %s733_s24 }
  0xe8   : > { %v593_v52 = vpack.c.bf16 %v1747_v50, %v1745_v44  ;;  %v1749_v57 = vpop.eup %1748  ;;  %v715_v50 = vstv %s714_s23 }
  0xe9   : > { %1752 = vtanh.f32 %v564_v55  ;;  %v717_v55 = vmul.f32 %v715_v50, %v2038_v25 }
  0xea   : > { %v547_v53 = vpop.f32.mrf.mxu2  ;;  %677 = vmatmul.bf16.gmra.mxu1 %v593_v52  ;;  %v716_v52 = vmul.f32 %v715_v50, %v2033_v24 }
  0xeb   : > { %v548_v62 = vadd.f32 %v547_v53, %v456_v56 }
  0xec   : > { %v529_v58 = vpop.f32.mrf.mxu0 }
  0xed   : > { %v1751_v60 = vpop.eup %1750  ;;  %v530_v61 = vadd.f32 %v529_v58, %v449_v54  ;;  %v572_v2 = vadd.f32 %v2162_v59, %v548_v62  ;;  %v724_v58 = vmul.f32 %v715_v50, %v2043_v26  ;;  %v719_v26 = vmul.f32 %v715_v50, %v2066_v31 }
  0xee   : > { %v597_v63 = vpack.c.bf16 %v1751_v60, %v1749_v57  ;;  %v727_v31 = vmul.f32 %v715_v50, %v2076_v33  ;;  %v722_v33 = vmul.f32 %v715_v50, %v2118_v45  ;;  %v730_v45 = vmul.f32 %v715_v50, %v2128_v47 }
  0xef   : > { %v565_v0 = vadd.f32 %v2162_v59, %v530_v61  ;;  %v1753_v7 = vpop.eup %1752 }
  0xf0   : > { %697 = vmatmul.bf16.gmra.mxu3 %v597_v63  ;;  %v718_v63 = vmul.f32 %v715_v50, %v2061_v30  ;;  %v726_v30 = vmul.f32 %v715_v50, %v2071_v32  ;;  %v721_v32 = vmul.f32 %v715_v50, %v2099_v40  ;;  %v729_v40 = vmul.f32 %v715_v50, %v2109_v42 }
  0xf1   : > { %1754 = vtanh.f32 %v565_v0 }
  0xf2   : > { %v549_v3 = vpop.f32.mrf.mxu2  ;;  %1756 = vtanh.f32 %v572_v2  ;;  %v725_v2 = vmul.f32 %v715_v50, %v2048_v27  ;;  %v720_v27 = vmul.f32 %v715_v50, %v2094_v39  ;;  %v728_v39 = vmul.f32 %v715_v50, %v2104_v41 }
  0xf3   : > { %v550_v4 = vadd.f32 %v549_v3, %v457_v1  ;;  %v723_v41 = vmul.f32 %v715_v50, %v2123_v46 }
  0xf4   : > { %v532_v6 = vpop.f32.mrf.mxu0 }
  0xf5   : > { %v573_v8 = vadd.f32 %v2162_v59, %v550_v4  ;;  %v533_v10 = vadd.f32 %v532_v6, %v450_v5 }
  0xf7   : > { %v1755_v9 = vpop.eup %1754  ;;  %1758 = vtanh.f32 %v573_v8  ;;  %v566_v14 = vadd.f32 %v2162_v59, %v533_v10 }
  0xf8   : > { %v594_v11 = vpack.c.bf16 %v1755_v9, %v1753_v7  ;;  %v1757_v16 = vpop.eup %1756 }
  0xf9   : > { %1760 = vtanh.f32 %v566_v14 }
  0xfa   : > { %v552_v12 = vpop.f32.mrf.mxu2  ;;  %682 = vmatmul.bf16.gmra.mxu1 %v594_v11 }
  0xfb   : > { %v553_v20 = vadd.f32 %v552_v12, %v458_v15 }
  0xfc   : > { %v534_v17 = vpop.f32.mrf.mxu0 }
  0xfd   : > { %v1759_v18 = vpop.eup %1758  ;;  %v535_v19 = vadd.f32 %v534_v17, %v451_v13  ;;  %v574_v28 = vadd.f32 %v2162_v59, %v553_v20 }
  0xfe   : > { %v598_v21 = vpack.c.bf16 %v1759_v18, %v1757_v16 }
  0xff   : > { %v567_v22 = vadd.f32 %v2162_v59, %v535_v19  ;;  %v1761_v35 = vpop.eup %1760 }
 0x100   : > { %702 = vmatmul.bf16.gmra.mxu3 %v598_v21 }
 0x101   : > { %1762 = vtanh.f32 %v567_v22 }
 0x102   : > { %v554_v29 = vpop.f32.mrf.mxu2  ;;  %1764 = vtanh.f32 %v574_v28 }
 0x103   : > { %v555_v34 = vadd.f32 %v554_v29, %v459_v23 }
 0x105   : > { %v575_v36 = vadd.f32 %v2162_v59, %v555_v34 }
 0x107   : > { %v1763_v37 = vpop.eup %1762  ;;  %1766 = vtanh.f32 %v575_v36 }
 0x108   : > { %v595_v38 = vpack.c.bf16 %v1763_v37, %v1761_v35  ;;  %v1765_v43 = vpop.eup %1764 }
 0x10a   : > { %687 = vmatmul.bf16.gmra.mxu1 %v595_v38 }
 0x10d   : > { %v1767_v44 = vpop.eup %1766 }
 0x10e   : > { %v599_v49 = vpack.c.bf16 %v1767_v44, %v1765_v43 }
 0x110   : > { %707 = vmatmul.bf16.gmra.mxu3 %v599_v49 }
 0x157   : > { %v673_v53 = vpop.f32.mrf.mxu1 }
 0x158   : > { %v735_v59 = vmul.f32 %v2226_v51, %v673_v53  ;;  %v731_v53 = vmul.f32 %v715_v50, %v2133_v48 }
 0x15a   : > { %v2230_v54 = vadd.f32 %v735_v59, %v716_v52 }
 0x15f   : > { %v675_v56 = vpop.f32.mrf.mxu1 }
 0x160   : > { %v736_v57 = vmul.f32 %v2226_v51, %v675_v56 }
 0x162   : > { %v2235_v60 = vadd.f32 %v736_v57, %v717_v55 }
 0x163   : > { %v693_v61 = vpop.f32.mrf.mxu3 }
 0x164   : > { %v743_v62 = vmul.f32 %v2226_v51, %v693_v61 }
 0x166   : > { %v2239_v24 = vadd.f32 %v743_v62, %v724_v58 }
 0x167   : > { %v678_v0 = vpop.f32.mrf.mxu1 }
 0x168   : > { %v737_v1 = vmul.f32 %v2226_v51, %v678_v0 }
 0x16a   : > { %v2243_v25 = vadd.f32 %v737_v1, %v718_v63 }
 0x16b   : > { %v695_v3 = vpop.f32.mrf.mxu3 }
 0x16c   : > { %v744_v4 = vmul.f32 %v2226_v51, %v695_v3 }
 0x16e   : > { %v2247_v5 = vadd.f32 %v744_v4, %v725_v2 }
 0x16f   : > { %v680_v6 = vpop.f32.mrf.mxu1 }
 0x170   : > { %v738_v7 = vmul.f32 %v2226_v51, %v680_v6 }
 0x172   : > { %v2251_v8 = vadd.f32 %v738_v7, %v719_v26 }
 0x173   : > { %v698_v9 = vpop.f32.mrf.mxu3 }
 0x174   : > { %v745_v10 = vmul.f32 %v2226_v51, %v698_v9 }
 0x176   : > { %v2255_v11 = vadd.f32 %v745_v10, %v726_v30 }
 0x177   : > { %v683_v12 = vpop.f32.mrf.mxu1 }
 0x178   : > { %v739_v13 = vmul.f32 %v2226_v51, %v683_v12 }
 0x17a   : > { %v2259_v14 = vadd.f32 %v739_v13, %v720_v27 }
 0x17b   : > { %v700_v15 = vpop.f32.mrf.mxu3 }
 0x17c   : > { %v746_v16 = vmul.f32 %v2226_v51, %v700_v15 }
 0x17e   : > { %v2263_v17 = vadd.f32 %v746_v16, %v727_v31 }
 0x17f   : > { %v685_v18 = vpop.f32.mrf.mxu1 }
 0x180   : > { %v740_v19 = vmul.f32 %v2226_v51, %v685_v18 }
 0x182   : > { %v2267_v20 = vadd.f32 %v740_v19, %v721_v32 }
 0x183   : > { %v703_v21 = vpop.f32.mrf.mxu3 }
 0x184   : > { %v747_v22 = vmul.f32 %v2226_v51, %v703_v21 }
 0x186   : > { %v2271_v23 = vadd.f32 %v747_v22, %v728_v39 }
 0x187   : > { %v688_v28 = vpop.f32.mrf.mxu1 }
 0x188   : > { %v741_v29 = vmul.f32 %v2226_v51, %v688_v28 }
 0x18a   : > { %v2275_v34 = vadd.f32 %v741_v29, %v722_v33 }
 0x18b   : > { %v705_v35 = vpop.f32.mrf.mxu3 }
 0x18c   : > { %v748_v36 = vmul.f32 %v2226_v51, %v705_v35 }
 0x18e   : > { %v2279_v37 = vadd.f32 %v748_v36, %v729_v40 }
 0x18f   : > { %v690_v38 = vpop.f32.mrf.mxu1 }
 0x190   : > { %v742_v43 = vmul.f32 %v2226_v51, %v690_v38 }
 0x192   : > { %v2283_v44 = vadd.f32 %v742_v43, %v723_v41 }
 0x193   : > { %v708_v49 = vpop.f32.mrf.mxu3 }
 0x194   : > { %v749_v52 = vmul.f32 %v2226_v51, %v708_v49 }
 0x196   : > { %v2286_v42 = vadd.f32 %v749_v52, %v730_v45 }
 0x19a   : > { %770 = sbr.rel (%p1501_p7) target bundleno = 431 (0x1af), region = 76 }
 0x19b   : > { %v710_v59 = vpop.f32.mrf.mxu3 }
 0x19c   : > { %v750_v55 = vmul.f32 %v2226_v51, %v710_v59 }
 0x19e   : > { %v2290_v46 = vadd.f32 %v750_v55, %v731_v53 }
 0x19f   : > { %771 = vst [vmem:[%s2897_s11] sm:$0xff] %v2230_v54 }
 0x1a0   : > { %772 = vst [vmem:[%s2897_s11 + $0x8] sm:$0xff] %v2235_v60 }
 0x1a1   : > { %773 = vst [vmem:[%s2897_s11 + $0x10] sm:$0xff] %v2243_v25 }
 0x1a2   : > { %774 = vst [vmem:[%s2897_s11 + $0x18] sm:$0xff] %v2251_v8 }
 0x1a3   : > { %775 = vst [vmem:[%s2897_s11 + $0x20] sm:$0xff] %v2259_v14 }
 0x1a4   : > { %776 = vst [vmem:[%s2897_s11 + $0x28] sm:$0xff] %v2267_v20 }
 0x1a5   : > { %777 = vst [vmem:[%s2897_s11 + $0x30] sm:$0xff] %v2275_v34 }
 0x1a6   : > { %778 = vst [vmem:[%s2897_s11 + $0x38] sm:$0xff] %v2283_v44 }
 0x1a7   : > { %779 = vst [vmem:[%s2897_s11 + $0x40] sm:$0xff] %v2239_v24 }
 0x1a8   : > { %780 = vst [vmem:[%s2897_s11 + $0x48] sm:$0xff] %v2247_v5 }
 0x1a9   : > { %781 = vst [vmem:[%s2897_s11 + $0x50] sm:$0xff] %v2255_v11 }
 0x1aa   : > { %782 = vst [vmem:[%s2897_s11 + $0x58] sm:$0xff] %v2263_v17 }
 0x1ab   : > { %783 = vst [vmem:[%s2897_s11 + $0x60] sm:$0xff] %v2271_v23 }
 0x1ac   : > { %784 = vst [vmem:[%s2897_s11 + $0x68] sm:$0xff] %v2279_v37 }
 0x1ad   : > { %785 = vst [vmem:[%s2897_s11 + $0x70] sm:$0xff] %v2286_v42 }
 0x1ae   : > { %786 = vst [vmem:[%s2897_s11 + $0x78] sm:$0xff] %v2290_v46 }
 0x1af PF: > { %p1502_p8 = scmp.ne.s32.totalorder %s1901_s22, 5 }
 0x1b0   : > { %s808_s30 = sld [smem:[#allocation2]] (!%p1502_p8) }
 0x1b1   : > { %790 = sbr.rel (%p1502_p8) target bundleno = 704 (0x2c0), region = 80  ;;  %s1351_s27 = sld [smem:[#allocation3]] (!%p1502_p8) }
 0x1b6   : > { %v1664_v47 = vld [vmem:[%s2895_s9 + $0x38] sm:$0xff]  ;;  %v1663_v51 = vld [vmem:[%s2895_s9 + $0x30] sm:$0xff]  ;;  %v791_v58 = vlaneseq  ;;  %v1662_v61 = vld [vmem:[%s2895_s9 + $0x28] sm:$0xff]  ;;  %v2419_v26 = vstv %s808_s30  ;;  %v1536_v59 = vpack.c.bf16 %v2235_v60, %v2230_v54  ;;  %v1554_v55 = vpack.c.bf16 %v2279_v37, %v2271_v23 }
 0x1b7   : > { %v2364_v48 = vld [vmem:[%s2894_s8 + $0x38] sm:$0xff]  ;;  %1068 = vmatpush.bf16.msra.mxu0 %v1664_v47  ;;  %1691 = vmatpush.bf16.msra.mxu3 %v1664_v47  ;;  %v2379_v56 = vld [vmem:[%s2894_s8 + $0x30] sm:$0xff]  ;;  %v2394_v62 = vld [vmem:[%s2894_s8 + $0x28] sm:$0xff]  ;;  %vm1828_vm11 = vmmov 1  }
 0x1b8   : > { %v2369_v50 = vld [vmem:[%s2896_s10 + $0x38] sm:$0xff]  ;;  %1165 = vmatpush.bf16.msra.mxu1 %v2364_v48  ;;  %v2384_v57 = vld [vmem:[%s2896_s10 + $0x30] sm:$0xff]  ;;  %v2399_v63 = vld [vmem:[%s2896_s10 + $0x28] sm:$0xff]  ;;  %v2401_v0 = vshrl.u32 %v791_v58, 7 }
 0x1b9   : > { %1286 = vmatpush.bf16.msra.mxu2 %v2369_v50  ;;  %v1661_v1 = vld [vmem:[%s2895_s9 + $0x20] sm:$0xff]  ;;  %v1660_v30 = vld [vmem:[%s2895_s9 + $0x18] sm:$0xff]  ;;  %v1659_v27 = vld [vmem:[%s2895_s9 + $0x10] sm:$0xff] }
 0x1ba   : > { %v2411_v2 = vld [vmem:[%s2894_s8 + $0x20] sm:$0xff]  ;;  %v793_v4 = vadd.s32 8, %v2401_v0  ;;  %v2422_v6 = vadd.s32 120, %v2401_v0  ;;  %v2425_v7 = vadd.s32 16, %v2401_v0  ;;  %v2435_v9 = vld [vmem:[%s2894_s8 + $0x18] sm:$0xff]  ;;  %vm810_vm0 = vcmp.lt.s32.totalorder %v2401_v0, %v2419_v26  ;;  %v2457_v12 = vld [vmem:[%s2894_s8 + $0x10] sm:$0xff] }
 0x1bb   : > { %1069 = vmatpush.bf16.msra.mxu0 %v1663_v51  ;;  %1692 = vmatpush.bf16.msra.mxu3 %v1663_v51  ;;  %v2416_v3 = vld [vmem:[%s2896_s10 + $0x20] sm:$0xff]  ;;  %v2440_v10 = vld [vmem:[%s2896_s10 + $0x18] sm:$0xff]  ;;  %v2462_v13 = vld [vmem:[%s2896_s10 + $0x10] sm:$0xff]  ;;  %v2468_v31 = vsel %vm810_vm0, %v2230_v54, 0.0  ;;  %v2488_v18 = vadd.s32 96, %v2401_v0  ;;  %v2496_v22 = vadd.s32 104, %v2401_v0 }
 0x1bc   : > { %1166 = vmatpush.bf16.msra.mxu1 %v2379_v56  ;;  %vm811_vm1 = vcmp.lt.s32.totalorder %v793_v4, %v2419_v26  ;;  %vm825_vm2 = vcmp.lt.s32.totalorder %v2422_v6, %v2419_v26  ;;  %vm812_vm3 = vcmp.lt.s32.totalorder %v2425_v7, %v2419_v26  ;;  %v1658_v19 = vld [vmem:[%s2895_s9 + $0x8] sm:$0xff]  ;;  %v858_v39 = vrot.slane %v2468_v31, 7  ;;  %v1657_v41 = vld [vmem:[%s2895_s9] sm:$0xff] }
 0x1bd   : > { %1287 = vmatpush.bf16.msra.mxu2 %v2384_v57  ;;  %v2473_v15 = vsel %vm811_vm1, %v2235_v60, 0.0  ;;  %v2479_v16 = vsel %vm825_vm2, %v2290_v46, 0.0  ;;  %v2485_v32 = vsel %vm812_vm3, %v2243_v25, 0.0  ;;  %vm874_vm4 = vcmp.lt.s32.totalorder %v2401_v0, 1  ;;  %v2504_v33 = vld [vmem:[%s2894_s8 + $0x8] sm:$0xff]  ;;  %v2530_v43 = vld [vmem:[%s2894_s8] sm:$0xff]  ;;  %vm1535_vm9 = vmpackc.low %vm811_vm1, %vm810_vm0 }
 0x1be   : > { %v859_v21 = vrot.slane %v2473_v15, 7  ;;  %v2509_v28 = vld [vmem:[%s2896_s10 + $0x8] sm:$0xff]  ;;  %v923_v29 = vrot.slane %v2468_v31, 1  ;;  %v924_v40 = vrot.slane %v2473_v15, 1  ;;  %v873_v35 = vrot.slane %v2479_v16, 7  ;;  %v2535_v45 = vld [vmem:[%s2896_s10] sm:$0xff] }
 0x1bf   : > { %1070 = vmatpush.bf16.msra.mxu0 %v1662_v61  ;;  %1693 = vmatpush.bf16.msra.mxu3 %v1662_v61  ;;  %v925_v36 = vrot.slane %v2485_v32, 1  ;;  %vm939_vm5 = vcmp.lt.s32.totalorder %v2401_v0, 7  ;;  %vm822_vm6 = vcmp.lt.s32.totalorder %v2488_v18, %v2419_v26  ;;  %vm823_vm7 = vcmp.lt.s32.totalorder %v2496_v22, %v2419_v26 }
 0x1c0   : > { %1167 = vmatpush.bf16.msra.mxu1 %v2394_v62  ;;  %v889_v38 = vsel %vm874_vm4, %v858_v39, %v859_v21  ;;  %v890_v49 = vsel %vm874_vm4, %v873_v35, %v858_v39  ;;  %v954_v53 = vsel %vm939_vm5, %v923_v29, %v924_v40  ;;  %vm1673_vm8 = vcmp.ne.s32.totalorder %v2401_v0, 0  ;;  %vm1553_vm10 = vmpackc.low %vm823_vm7, %vm822_vm6 }
 0x1c1   : > { %1288 = vmatpush.bf16.msra.mxu2 %v2399_v63  ;;  %v953_v52 = vsel %vm939_vm5, %v924_v40, %v925_v36  ;;  %v795_v47 = vadd.s32 24, %v2401_v0  ;;  %v2559_v51 = vadd.s32 32, %v2401_v0  ;;  %v1593_v58 = vpack.c.bf16 %v889_v38, %v890_v49  ;;  %vm1592_vm12 = vmpackc.low %vm1828_vm11, %vm1673_vm8 }
 0x1c2   : > { %v1214_v61 = vpack.c.bf16 %v953_v52, %v954_v53  ;;  %v2598_v39 = vadd.s32 88, %v2401_v0  ;;  %v1557_v40 = vpack.c.bf16 %v2290_v46, %v2286_v42  ;;  %v1551_v31 = vpack.c.bf16 %v2263_v17, %v2255_v11 }
 0x1c3   : > { %1071 = vmatpush.bf16.msra.mxu0 %v1661_v1  ;;  %1694 = vmatpush.bf16.msra.mxu3 %v1661_v1  ;;  %vm813_vm13 = vcmp.lt.s32.totalorder %v795_v47, %v2419_v26  ;;  %vm814_vm14 = vcmp.lt.s32.totalorder %v2559_v51, %v2419_v26  ;;  %v860_v1 = vrot.slane %v2485_v32, 7  ;;  %v2671_v47 = vadd.s32 80, %v2401_v0 }
 0x1c4   : > { %1168 = vmatpush.bf16.msra.mxu1 %v2411_v2  ;;  %v829_v54 = vsel %vm813_vm13, %v2251_v8, 0.0  ;;  %v830_v60 = vsel %vm814_vm14, %v2259_v14, 0.0  ;;  %vm1538_vm0 = vmpackc.low %vm813_vm13, %vm812_vm3  ;;  %vm821_vm3 = vcmp.lt.s32.totalorder %v2598_v39, %v2419_v26 }
 0x1c5   : > { %1289 = vmatpush.bf16.msra.mxu2 %v2416_v3  ;;  %v861_v4 = vrot.slane %v829_v54, 7  ;;  %v2642_v46 = vsel %vm821_vm3, %v2263_v17, 0.0  ;;  %v862_v49 = vrot.slane %v830_v60, 7 }
 0x1c7   : > { %1072 = vmatpush.bf16.msra.mxu0 %v1660_v30  ;;  %1695 = vmatpush.bf16.msra.mxu3 %v1660_v30  ;;  %v926_v30 = vrot.slane %v829_v54, 1  ;;  %v887_v15 = vsel %vm874_vm4, %v860_v1, %v861_v4 }
 0x1c8   : > { %1169 = vmatpush.bf16.msra.mxu1 %v2435_v9 }
 0x1c9   : > { %1290 = vmatpush.bf16.msra.mxu2 %v2440_v10  ;;  %v952_v32 = vsel %vm939_vm5, %v925_v36, %v926_v30  ;;  %v2612_v36 = vadd.s32 48, %v2401_v0 }
 0x1cb   : > { %1073 = vmatpush.bf16.msra.mxu0 %v1659_v27  ;;  %1696 = vmatpush.bf16.msra.mxu3 %v1659_v27  ;;  %v927_v27 = vrot.slane %v830_v60, 1 }
 0x1cc   : > { %1170 = vmatpush.bf16.msra.mxu1 %v2457_v12 }
 0x1cd   : > { %1291 = vmatpush.bf16.msra.mxu2 %v2462_v13 }
 0x1cf   : > { %1074 = vmatpush.bf16.msra.mxu0 %v1658_v19  ;;  %1697 = vmatpush.bf16.msra.mxu3 %v1658_v19  ;;  %v951_v19 = vsel %vm939_vm5, %v926_v30, %v927_v27 }
 0x1d0   : > { %1171 = vmatpush.bf16.msra.mxu1 %v2504_v33  ;;  %v1215_v7 = vpack.c.bf16 %v951_v19, %v952_v32 }
 0x1d1   : > { %1292 = vmatpush.bf16.msra.mxu2 %v2509_v28 }
 0x1d3   : > { %1075 = vmatpush.bf16.msra.mxu0 %v1657_v41  ;;  %1698 = vmatpush.bf16.msra.mxu3 %v1657_v41  ;;  %v869_v41 = vrot.slane %v2642_v46, 7 }
 0x1d4   : > { %1172 = vmatpush.bf16.msra.mxu1 %v2530_v43 }
 0x1d5   : > { %1293 = vmatpush.bf16.msra.mxu2 %v2535_v45 }
 0x1d6   : > { %1537 = vmatmul.msk.bf16.vlgmr.msra.gmra.mxu0 %vm1535_vm9, %v1536_v59  ;;  %1555 = vmatmul.msk.bf16.vlgmr.msra.gmra.mxu3 %vm1553_vm10, %v1554_v55  ;;  %vm816_vm9 = vcmp.lt.s32.totalorder %v2612_v36, %v2419_v26  ;;  %v2668_v55 = vadd.s32 72, %v2401_v0 }
 0x1d7   : > { %1699 = vmatpush.bf16.msrb.mxu3 %v2364_v48  ;;  %1594 = vmatmul.msk.bf16.vlgmr.msra.gmra.mxu1 %vm1592_vm12, %v1593_v58  ;;  %v2583_v48 = vadd.s32 112, %v2401_v0 }
 0x1d8   : > { %1294 = vmatmul.bf16.vlgmr.msra.gmra.mxu2 %v1214_v61 }
 0x1d9   : > { %vm824_vm15 = vcmp.lt.s32.totalorder %v2583_v48, %v2419_v26 }
 0x1da   : > { %vm1556_vm1 = vmpackc.low %vm825_vm2, %vm824_vm15  ;;  %v840_v51 = vsel %vm824_vm15, %v2286_v42, 0.0 }
 0x1db   : > { %1700 = vmatpush.bf16.msrb.mxu3 %v2379_v56  ;;  %v888_v56 = vsel %vm874_vm4, %v859_v21, %v860_v1  ;;  %v1539_v21 = vpack.c.bf16 %v2251_v8, %v2243_v25  ;;  %v2630_v25 = vsel %vm822_vm6, %v2271_v23, 0.0  ;;  %v2636_v8 = vsel %vm823_vm7, %v2279_v37, 0.0 }
 0x1dc   : > { %v2648_v23 = vadd.s32 64, %v2401_v0  ;;  %v832_v37 = vsel %vm816_vm9, %v2275_v34, 0.0  ;;  %v870_v18 = vrot.slane %v2630_v25, 7  ;;  %v871_v22 = vrot.slane %v2636_v8, 7 }
 0x1dd   : > { %v929_v53 = vrot.slane %v832_v37, 1  ;;  %vm819_vm6 = vcmp.lt.s32.totalorder %v2668_v55, %v2419_v26  ;;  %vm820_vm7 = vcmp.lt.s32.totalorder %v2671_v47, %v2419_v26  ;;  %v1542_v1 = vpack.c.bf16 %v2267_v20, %v2259_v14 }
 0x1de   : > { %vm818_vm2 = vcmp.lt.s32.totalorder %v2648_v23, %v2419_v26  ;;  %v878_v59 = vsel %vm874_vm4, %v869_v41, %v870_v18  ;;  %v835_v30 = vsel %vm819_vm6, %v2247_v5, 0.0  ;;  %v935_v36 = vrot.slane %v2630_v25, 1  ;;  %vm1550_vm15 = vmpackc.low %vm821_vm3, %vm820_vm7 }
 0x1df   : > { %1701 = vmatpush.bf16.msrb.mxu3 %v2394_v62  ;;  %v797_v62 = vadd.s32 40, %v2401_v0  ;;  %v2681_v61 = vsel %vm818_vm2, %v2239_v24, 0.0 }
 0x1e1   : > { %vm815_vm8 = vcmp.lt.s32.totalorder %v797_v62, %v2419_v26 }
 0x1e2   : > { %vm1541_vm10 = vmpackc.low %vm815_vm8, %vm814_vm14 }
 0x1e3   : > { %1702 = vmatpush.bf16.msrb.mxu3 %v2411_v2  ;;  %v973_v2 = vpack.c.bf16 %v887_v15, %v888_v56  ;;  %v799_v56 = vadd.s32 56, %v2401_v0  ;;  %v932_v15 = vrot.slane %v835_v30, 1  ;;  %vm1547_vm14 = vmpackc.low %vm819_vm6, %vm818_vm2 }
 0x1e5   : > { %vm817_vm12 = vcmp.lt.s32.totalorder %v799_v56, %v2419_v26  ;;  %v2807_v26 = vstv %s1351_s27 }
 0x1e6   : > { %1540 = vmatmul.msk.bf16.gmra.mxu0 %vm1538_vm0, %v1539_v21  ;;  %1558 = vmatmul.msk.bf16.gmra.mxu3 %vm1556_vm1, %v1557_v40  ;;  %v833_v62 = vsel %vm817_vm12, %v2283_v44, 0.0  ;;  %v872_v40 = vrot.slane %v840_v51, 7  ;;  %vm1544_vm13 = vmpackc.low %vm817_vm12, %vm816_vm9 }
 0x1e7   : > { %1703 = vmatpush.bf16.msrb.mxu3 %v2435_v9  ;;  %1178 = vmatmul.bf16.gmra.mxu1 %v973_v2  ;;  %v831_v9 = vsel %vm815_vm8, %v2267_v20, 0.0  ;;  %v865_v2 = vrot.slane %v833_v62, 7 }
 0x1e8   : > { %1299 = vmatmul.bf16.gmra.mxu2 %v1215_v7  ;;  %v863_v38 = vrot.slane %v831_v9, 7  ;;  %v928_v52 = vrot.slane %v831_v9, 1  ;;  %v930_v7 = vrot.slane %v833_v62, 1  ;;  %v864_v9 = vrot.slane %v832_v37, 7 }
 0x1e9   : > { %v876_v42 = vsel %vm874_vm4, %v871_v22, %v872_v40 }
 0x1ea   : > { %v885_v58 = vsel %vm874_vm4, %v862_v49, %v863_v38  ;;  %v949_v54 = vsel %vm939_vm5, %v928_v52, %v929_v53  ;;  %v950_v60 = vsel %vm939_vm5, %v927_v27, %v928_v52  ;;  %v2702_v27 = vsel %vm820_vm7, %v2255_v11, 0.0 }
 0x1eb   : > { %1704 = vmatpush.bf16.msrb.mxu3 %v2457_v12  ;;  %v877_v12 = vsel %vm874_vm4, %v870_v18, %v871_v22  ;;  %v933_v14 = vrot.slane %v2702_v27, 1  ;;  %v1216_v19 = vpack.c.bf16 %v949_v54, %v950_v60  ;;  %v875_v18 = vsel %vm874_vm4, %v872_v40, %v873_v35 }
 0x1ec   : > { %v884_v48 = vsel %vm874_vm4, %v863_v38, %v864_v9  ;;  %v948_v37 = vsel %vm939_vm5, %v929_v53, %v930_v7  ;;  %v1545_v35 = vpack.c.bf16 %v2283_v44, %v2275_v34  ;;  %v867_v52 = vrot.slane %v835_v30, 7 }
 0x1ed   : > { %v868_v22 = vrot.slane %v2702_v27, 7 }
 0x1ef   : > { %1705 = vmatpush.bf16.msrb.mxu3 %v2504_v33  ;;  %v886_v33 = vsel %vm874_vm4, %v861_v4, %v862_v49  ;;  %v978_v4 = vpack.c.bf16 %v877_v12, %v878_v59  ;;  %v979_v49 = vpack.c.bf16 %v875_v18, %v876_v42  ;;  %v879_v53 = vsel %vm874_vm4, %v868_v22, %v869_v41 }
 0x1f0   : > { %v974_v20 = vpack.c.bf16 %v885_v58, %v886_v33  ;;  %v880_v34 = vsel %vm874_vm4, %v867_v52, %v868_v22  ;;  %v936_v12 = vrot.slane %v2636_v8, 1  ;;  %v866_v59 = vrot.slane %v2681_v61, 7 }
 0x1f1   : > { %v977_v44 = vpack.c.bf16 %v879_v53, %v880_v34  ;;  %v1548_v8 = vpack.c.bf16 %v2247_v5, %v2239_v24 }
 0x1f2   : > { %v942_v58 = vsel %vm939_vm5, %v935_v36, %v936_v12  ;;  %v882_v25 = vsel %vm874_vm4, %v865_v2, %v866_v59 }
 0x1f3   : > { %1706 = vmatpush.bf16.msrb.mxu3 %v2530_v43  ;;  %v931_v43 = vrot.slane %v2681_v61, 1  ;;  %v934_v61 = vrot.slane %v2642_v46, 1 }
 0x1f5   : > { %v946_v32 = vsel %vm939_vm5, %v931_v43, %v932_v15  ;;  %v943_v23 = vsel %vm939_vm5, %v934_v61, %v935_v36  ;;  %v944_v55 = vsel %vm939_vm5, %v933_v14, %v934_v61 }
 0x1f6   : > { %1543 = vmatmul.msk.bf16.gmra.mxu0 %vm1541_vm10, %v1542_v1  ;;  %1203 = vmatmul.bf16.vlgmr.msrb.gmra.mxu3 %v978_v4 }
 0x1f7   : > { %1707 = vmatpush.bf16.msra.mxu3 %v2369_v50  ;;  %v945_v50 = vsel %vm939_vm5, %v932_v15, %v933_v14  ;;  %1183 = vmatmul.bf16.gmra.mxu1 %v974_v20 }
 0x1f8   : > { %v1218_v21 = vpack.c.bf16 %v945_v50, %v946_v32  ;;  %1304 = vmatmul.bf16.gmra.mxu2 %v1216_v19 }
 0x1fb   : > { %1708 = vmatpush.bf16.msra.mxu3 %v2384_v57  ;;  %v883_v57 = vsel %vm874_vm4, %v864_v9, %v865_v2 }
 0x1ff   : > { %1709 = vmatpush.bf16.msra.mxu3 %v2399_v63  ;;  %v947_v63 = vsel %vm939_vm5, %v930_v7, %v931_v43 }
 0x200   : > { %v1217_v38 = vpack.c.bf16 %v947_v63, %v948_v37 }
 0x203   : > { %1710 = vmatpush.bf16.msra.mxu3 %v2416_v3  ;;  %v975_v3 = vpack.c.bf16 %v883_v57, %v884_v48 }
 0x206   : > { %1546 = vmatmul.msk.bf16.gmra.mxu0 %vm1544_vm13, %v1545_v35  ;;  %1208 = vmatmul.bf16.gmra.mxu3 %v979_v49 }
 0x207   : > { %1711 = vmatpush.bf16.msra.mxu3 %v2440_v10  ;;  %1188 = vmatmul.bf16.gmra.mxu1 %v975_v3  ;;  %v937_v10 = vrot.slane %v840_v51, 1 }
 0x208   : > { %1309 = vmatmul.bf16.gmra.mxu2 %v1217_v38 }
 0x209   : > { %v941_v41 = vsel %vm939_vm5, %v936_v12, %v937_v10 }
 0x20b   : > { %1712 = vmatpush.bf16.msra.mxu3 %v2462_v13  ;;  %v881_v13 = vsel %vm874_vm4, %v866_v59, %v867_v52  ;;  %vm1674_vm4 = vcmp.ne.s32.totalorder %v2422_v6, 127 }
 0x20c   : > { %v976_v33 = vpack.c.bf16 %v881_v13, %v882_v25  ;;  %vm1628_vm0 = vmpackc.low %vm1674_vm4, %vm1828_vm11 }
 0x20f   : > { %1713 = vmatpush.bf16.msra.mxu3 %v2509_v28  ;;  %v1220_v28 = vpack.c.bf16 %v941_v41, %v942_v58 }
 0x213   : > { %1714 = vmatpush.bf16.msra.mxu3 %v2535_v45  ;;  %v938_v45 = vrot.slane %v2479_v16, 1 }
 0x215   : > { %v940_v24 = vsel %vm939_vm5, %v937_v10, %v938_v45  ;;  %v955_v5 = vsel %vm939_vm5, %v938_v45, %v923_v29  ;;  %v1219_v29 = vpack.c.bf16 %v943_v23, %v944_v55 }
 0x216   : > { %1549 = vmatmul.msk.bf16.gmra.mxu0 %vm1547_vm14, %v1548_v8  ;;  %1324 = vmatmul.bf16.vlgmr.msra.gmra.mxu3 %v1220_v28  ;;  %v1629_v16 = vpack.c.bf16 %v955_v5, %v940_v24 }
 0x217   : > { %1193 = vmatmul.bf16.gmra.mxu1 %v976_v33 }
 0x218   : > { %1314 = vmatmul.bf16.gmra.mxu2 %v1218_v21 }
 0x226   : > { %1552 = vmatmul.msk.bf16.gmra.mxu0 %vm1550_vm15, %v1551_v31  ;;  %1630 = vmatmul.msk.bf16.gmra.mxu3 %vm1628_vm0, %v1629_v16 }
 0x227   : > { %1198 = vmatmul.bf16.gmra.mxu1 %v977_v44 }
 0x228   : > { %1319 = vmatmul.bf16.gmra.mxu2 %v1219_v29 }
 0x253   : > { %v1077_v0 = vpop.f32.mrf.mxu0 }
 0x254   : > { %v1174_v6 = vpop.f32.mrf.mxu1 }
 0x255   : > { %v1175_v46 = vadd.f32 %v1174_v6, %v1077_v0 }
 0x259   : > { %v2805_v47 = vpop.f32.mrf.mxu3 }
 0x25b   : > { %v1295_v54 = vpop.f32.mrf.mxu2  ;;  %v1079_v60 = vpop.f32.mrf.mxu0 }
 0x25c   : > { %v1335_v39 = vadd.f32 %v1295_v54, %v1175_v46  ;;  %v1176_v11 = vpop.f32.mrf.mxu1 }
 0x25d   : > { %v1177_v1 = vadd.f32 %v1176_v11, %v1079_v60 }
 0x25e   : > { %v1353_v17 = vadd.f32 %v2807_v26, %v1335_v39 }
 0x260   : > { %1768 = vtanh.f32 %v1353_v17 }
 0x261   : > { %v2810_v4 = vpop.f32.mrf.mxu3 }
 0x263   : > { %v1297_v30 = vpop.f32.mrf.mxu2  ;;  %v1082_v56 = vpop.f32.mrf.mxu0 }
 0x264   : > { %v1336_v27 = vadd.f32 %v1297_v30, %v1177_v1  ;;  %v1179_v43 = vpop.f32.mrf.mxu1 }
 0x265   : > { %v1180_v20 = vadd.f32 %v1179_v43, %v1082_v56 }
 0x266   : > { %v1769_v15 = vpop.eup %1768  ;;  %v1354_v14 = vadd.f32 %v2807_v26, %v1336_v27 }
 0x267   : > { %1385 = vst [vmem:[%s2897_s11] sm:$0xff] %v1769_v15 }
 0x268   : > { %1770 = vtanh.f32 %v1354_v14 }
 0x269   : > { %v2816_v19 = vpop.f32.mrf.mxu3 }
 0x26b   : > { %v1300_v50 = vpop.f32.mrf.mxu2  ;;  %v1084_v21 = vpop.f32.mrf.mxu0 }
 0x26c   : > { %v1337_v32 = vadd.f32 %v1300_v50, %v1180_v20  ;;  %v1181_v51 = vpop.f32.mrf.mxu1 }
 0x26d   : > { %v1182_v2 = vadd.f32 %v1181_v51, %v1084_v21 }
 0x26e   : > { %v1771_v62 = vpop.eup %1770  ;;  %v1355_v40 = vadd.f32 %v2807_v26, %v1337_v32 }
 0x26f   : > { %1386 = vst [vmem:[%s2897_s11 + $0x8] sm:$0xff] %v1771_v62 }
 0x270   : > { %1772 = vtanh.f32 %v1355_v40 }
 0x271   : > { %v2822_v7 = vpop.f32.mrf.mxu3 }
 0x273   : > { %v1302_v9 = vpop.f32.mrf.mxu2  ;;  %v1087_v42 = vpop.f32.mrf.mxu0 }
 0x274   : > { %v1338_v18 = vadd.f32 %v1302_v9, %v1182_v2  ;;  %v1184_v57 = vpop.f32.mrf.mxu1 }
 0x275   : > { %v1185_v37 = vadd.f32 %v1184_v57, %v1087_v42 }
 0x276   : > { %v1773_v48 = vpop.eup %1772  ;;  %v1356_v63 = vadd.f32 %v2807_v26, %v1338_v18 }
 0x277   : > { %1387 = vst [vmem:[%s2897_s11 + $0x10] sm:$0xff] %v1773_v48 }
 0x278   : > { %1774 = vtanh.f32 %v1356_v63 }
 0x279   : > { %v1204_v35 = vpop.f32.mrf.mxu3 }
 0x27a   : > { %v1205_v54 = vadd.f32 %v1204_v35, %v2805_v47 }
 0x27b   : > { %v1305_v49 = vpop.f32.mrf.mxu2  ;;  %v1089_v22 = vpop.f32.mrf.mxu0 }
 0x27c   : > { %v1339_v52 = vadd.f32 %v1305_v49, %v1185_v37  ;;  %v1186_v3 = vpop.f32.mrf.mxu1 }
 0x27d   : > { %v1187_v34 = vadd.f32 %v1186_v3, %v1089_v22 }
 0x27e   : > { %v1775_v38 = vpop.eup %1774  ;;  %v1357_v53 = vadd.f32 %v2807_v26, %v1339_v52 }
 0x27f   : > { %1388 = vst [vmem:[%s2897_s11 + $0x18] sm:$0xff] %v1775_v38 }
 0x280   : > { %1776 = vtanh.f32 %v1357_v53 }
 0x281   : > { %v1206_v44 = vpop.f32.mrf.mxu3 }
 0x282   : > { %v1207_v15 = vadd.f32 %v1206_v44, %v2810_v4 }
 0x283   : > { %v1307_v36 = vpop.f32.mrf.mxu2  ;;  %v1092_v10 = vpop.f32.mrf.mxu0 }
 0x284   : > { %v1340_v12 = vadd.f32 %v1307_v36, %v1187_v34  ;;  %v1189_v59 = vpop.f32.mrf.mxu1 }
 0x285   : > { %v1190_v13 = vadd.f32 %v1189_v59, %v1092_v10 }
 0x286   : > { %v1777_v41 = vpop.eup %1776  ;;  %v1358_v58 = vadd.f32 %v2807_v26, %v1340_v12 }
 0x287   : > { %1389 = vst [vmem:[%s2897_s11 + $0x20] sm:$0xff] %v1777_v41 }
 0x288   : > { %1778 = vtanh.f32 %v1358_v58 }
 0x289   : > { %v1209_v25 = vpop.f32.mrf.mxu3 }
 0x28a   : > { %v1210_v18 = vadd.f32 %v1209_v25, %v2816_v19 }
 0x28b   : > { %v1310_v8 = vpop.f32.mrf.mxu2  ;;  %v1094_v33 = vpop.f32.mrf.mxu0 }
 0x28c   : > { %v1341_v28 = vadd.f32 %v1310_v8, %v1190_v13  ;;  %v1191_v45 = vpop.f32.mrf.mxu1 }
 0x28d   : > { %v1192_v5 = vadd.f32 %v1191_v45, %v1094_v33 }
 0x28e   : > { %v1779_v61 = vpop.eup %1778  ;;  %v1359_v24 = vadd.f32 %v2807_v26, %v1341_v28 }
 0x28f   : > { %1390 = vst [vmem:[%s2897_s11 + $0x28] sm:$0xff] %v1779_v61 }
 0x290   : > { %1780 = vtanh.f32 %v1359_v24 }
 0x291   : > { %v1211_v23 = vpop.f32.mrf.mxu3 }
 0x292   : > { %v1212_v3 = vadd.f32 %v1211_v23, %v2822_v7 }
 0x293   : > { %v1312_v55 = vpop.f32.mrf.mxu2  ;;  %v1097_v16 = vpop.f32.mrf.mxu0 }
 0x294   : > { %v1342_v31 = vadd.f32 %v1312_v55, %v1192_v5  ;;  %v1194_v29 = vpop.f32.mrf.mxu1 }
 0x295   : > { %v1195_v46 = vadd.f32 %v1194_v29, %v1097_v16 }
 0x296   : > { %v1781_v0 = vpop.eup %1780  ;;  %v1360_v6 = vadd.f32 %v2807_v26, %v1342_v31 }
 0x297   : > { %1391 = vst [vmem:[%s2897_s11 + $0x30] sm:$0xff] %v1781_v0 }
 0x298   : > { %1782 = vtanh.f32 %v1360_v6 }
 0x299   : > { %v1325_v39 = vpop.f32.mrf.mxu3 }
 0x29a   : > { %v1347_v11 = vadd.f32 %v1325_v39, %v1205_v54 }
 0x29b   : > { %v1315_v60 = vpop.f32.mrf.mxu2  ;;  %v1099_v1 = vpop.f32.mrf.mxu0 }
 0x29c   : > { %v1343_v17 = vadd.f32 %v1315_v60, %v1195_v46  ;;  %v1365_v30 = vadd.f32 %v2807_v26, %v1347_v11  ;;  %v1196_v27 = vpop.f32.mrf.mxu1 }
 0x29d   : > { %v1197_v47 = vadd.f32 %v1196_v27, %v1099_v1 }
 0x29e   : > { %v1783_v56 = vpop.eup %1782  ;;  %v1361_v43 = vadd.f32 %v2807_v26, %v1343_v17  ;;  %1784 = vtanh.f32 %v1365_v30 }
 0x29f   : > { %1392 = vst [vmem:[%s2897_s11 + $0x38] sm:$0xff] %v1783_v56 }
 0x2a0   : > { %1786 = vtanh.f32 %v1361_v43 }
 0x2a1   : > { %v1327_v14 = vpop.f32.mrf.mxu3 }
 0x2a2   : > { %v1348_v50 = vadd.f32 %v1327_v14, %v1207_v15 }
 0x2a3   : > { %v1317_v20 = vpop.f32.mrf.mxu2  ;;  %v1102_v62 = vpop.f32.mrf.mxu0 }
 0x2a4   : > { %v1344_v32 = vadd.f32 %v1317_v20, %v1197_v47  ;;  %v1785_v21 = vpop.eup %1784  ;;  %v1366_v51 = vadd.f32 %v2807_v26, %v1348_v50  ;;  %v1199_v40 = vpop.f32.mrf.mxu1 }
 0x2a5   : > { %1397 = vst [vmem:[%s2897_s11 + $0x60] sm:$0xff] %v1785_v21  ;;  %v1200_v4 = vadd.f32 %v1199_v40, %v1102_v62 }
 0x2a6   : > { %v1787_v2 = vpop.eup %1786  ;;  %v1362_v9 = vadd.f32 %v2807_v26, %v1344_v32  ;;  %1788 = vtanh.f32 %v1366_v51 }
 0x2a7   : > { %1393 = vst [vmem:[%s2897_s11 + $0x40] sm:$0xff] %v1787_v2 }
 0x2a8   : > { %1790 = vtanh.f32 %v1362_v9 }
 0x2a9   : > { %v1330_v42 = vpop.f32.mrf.mxu3 }
 0x2aa   : > { %v1349_v48 = vadd.f32 %v1330_v42, %v1210_v18 }
 0x2ab   : > { %v1320_v57 = vpop.f32.mrf.mxu2  ;;  %v1104_v19 = vpop.f32.mrf.mxu0 }
 0x2ac   : > { %v1345_v63 = vadd.f32 %v1320_v57, %v1200_v4  ;;  %v1789_v37 = vpop.eup %1788  ;;  %v1367_v35 = vadd.f32 %v2807_v26, %v1349_v48  ;;  %v1201_v22 = vpop.f32.mrf.mxu1 }
 0x2ad   : > { %1398 = vst [vmem:[%s2897_s11 + $0x68] sm:$0xff] %v1789_v37  ;;  %v1202_v38 = vadd.f32 %v1201_v22, %v1104_v19 }
 0x2ae   : > { %v1791_v49 = vpop.eup %1790  ;;  %v1363_v52 = vadd.f32 %v2807_v26, %v1345_v63  ;;  %1792 = vtanh.f32 %v1367_v35 }
 0x2af   : > { %1394 = vst [vmem:[%s2897_s11 + $0x48] sm:$0xff] %v1791_v49 }
 0x2b0   : > { %1794 = vtanh.f32 %v1363_v52 }
 0x2b1   : > { %v1332_v53 = vpop.f32.mrf.mxu3 }
 0x2b2   : > { %v1350_v44 = vadd.f32 %v1332_v53, %v1212_v3 }
 0x2b3   : > { %v1322_v34 = vpop.f32.mrf.mxu2 }
 0x2b4   : > { %v1346_v36 = vadd.f32 %v1322_v34, %v1202_v38  ;;  %v1793_v12 = vpop.eup %1792  ;;  %v1368_v10 = vadd.f32 %v2807_v26, %v1350_v44 }
 0x2b5   : > { %1399 = vst [vmem:[%s2897_s11 + $0x70] sm:$0xff] %v1793_v12 }
 0x2b6   : > { %v1795_v59 = vpop.eup %1794  ;;  %v1364_v41 = vadd.f32 %v2807_v26, %v1346_v36  ;;  %1796 = vtanh.f32 %v1368_v10 }
 0x2b7   : > { %1395 = vst [vmem:[%s2897_s11 + $0x50] sm:$0xff] %v1795_v59 }
 0x2b8   : > { %1798 = vtanh.f32 %v1364_v41 }
 0x2bc   : > { %v1797_v7 = vpop.eup %1796 }
 0x2bd   : > { %1400 = vst [vmem:[%s2897_s11 + $0x78] sm:$0xff] %v1797_v7 }
 0x2be   : > { %v1799_v58 = vpop.eup %1798 }
 0x2bf   : > { %1396 = vst [vmem:[%s2897_s11 + $0x58] sm:$0xff] %v1799_v58 }
 0x2c0 PF: > { %s24_s21 = sadd.s32 1, %s1825_s21  }
 0x2c1   : > { %p21_p9 = scmp.ge.s32.totalorder %s24_s21, 8  }
 0x2c3   :  { %23 = sbr.rel (!%p21_p9) target bundleno = 4 (0x4), region = 105 }
 0x2c8   :  { %1412 = vsyncpa [#allocation5], 1 }
 0x2c9   :  { %1414 = vsyncpa [#allocation5 + $0x1], 1 }

</bundles_post_ra>
